<compile_context>
chip_gen: v7x
topology: tpu7x:2x2x1
jax: 0.10.0
libtpu: 0.0.40
codegen_flags: <defaults>
</compile_context>

<pallas_src>
import functools

import jax
import jax.numpy as jnp
from jax import lax
from jax.experimental import pallas as pl
from jax.experimental.pallas import tpu as pltpu

_LANE = 128
_SUBLANE = 8


def _fused_kernel(xpos_ref, ypos_ref, zpos_ref,       # scalar prefetch (SMEM)
                  hx_ref, hy_ref, hz_ref,              # [B, S, H] encoder outputs (VMEM)
                  w1_ref, b1_ref,                      # folded fc1: [3H, M2] bf16, [1, M2] f32
                  w2_ref, b2_ref,                      # fc2: [M2, C_pad] bf16, [1, C_pad] f32
                  out_ref):                            # [rows_pad, C_pad] f32 logits
    B, S, H = hx_ref.shape
    rows = 3 * B
    rows_pad = out_ref.shape[0]

    # ---- Event gather, fused into the kernel.
    # Each unique row (A_i, B_i, C_i) is produced exactly once.  The gather is
    # a masked reduce over the (tiny) sequence axis: no DMA descriptors, no
    # per-copy waits, no dynamic sublane slicing — pure VPU select + XLU sum.
    def gather(h_ref, pos_ref):
        picked = []
        for i in range(B):                 # B is small & static; unrolled
            tile = h_ref[i]                # [S, H] f32
            sel = lax.broadcasted_iota(jnp.int32, (S, H), 0) == pos_ref[i]
            picked.append(
                jnp.sum(jnp.where(sel, tile, 0.0), axis=0, keepdims=True))
        return jnp.concatenate(picked, axis=0)           # [B, H]

    A = gather(hx_ref, xpos_ref)           # output_x[i, x_position[i], :]
    Bv = gather(hy_ref, ypos_ref)          # output_y[i, y_position[i], :]
    Cv = gather(hz_ref, zpos_ref)          # output_z[i, z_position[i], :]

    # Stack the three pairs along the row axis (reusing the gathered rows):
    #   rows [0 : B)    -> alpha (A, B)
    #   rows [B : 2B)   -> beta  (B, C)
    #   rows [2B: 3B)   -> gamma (A, C)
    e1 = jnp.concatenate([A, Bv, A], axis=0)             # [3B, H]
    e2 = jnp.concatenate([Bv, Cv, Cv], axis=0)           # [3B, H]

    # Single fused fc1 operand: rep = [e1 | e2 | e1*e2]  (K = 3H).  The
    # "e1 - e2" concat term is folded into W1 in the wrapper.
    rep = jnp.concatenate([e1, e2, e1 * e2], axis=1)     # [3B, 3H] f32
    if rows_pad > rows:                                   # sublane padding rows
        rep = jnp.concatenate(
            [rep, jnp.zeros((rows_pad - rows, 3 * H), rep.dtype)], axis=0)

    # fc1 (+ bias) and LeakyReLU(0.2); bf16 matmul operands, f32 accumulation.
    h = jnp.dot(rep.astype(jnp.bfloat16), w1_ref[...],
                preferred_element_type=jnp.float32) + b1_ref[...]
    h = jnp.where(h > 0, h, 0.2 * h)

    # fc2 (+ bias); lane-dense (C padded to 128) unmasked output store.
    logits = jnp.dot(h.astype(jnp.bfloat16), w2_ref[...],
                     preferred_element_type=jnp.float32) + b2_ref[...]
    out_ref[...] = logits


def prepare_params(params, hidden_size):
    """One-time weight transform — do this at model load, NOT per forward.

    Folds concat([e1, e2, e1-e2, e1*e2]) @ W1 algebraically:
        W1a = W1[:H] + W1[2H:3H]   (multiplies e1)
        W1b = W1[H:2H] - W1[2H:3H] (multiplies e2)
        W1c = W1[3H:4H]            (multiplies e1*e2)
    and concatenates them into one [3H, M2] matrix so fc1 is a single K=3H
    matmul.  fc2 is lane-padded to 128 for an unmasked output store.
    """
    H = hidden_size
    w1, b1, w2, b2 = params["w1"], params["b1"], params["w2"], params["b2"]
    M2 = w1.shape[1]
    C = w2.shape[1]
    w1a = w1[0:H] + w1[2 * H:3 * H]
    w1b = w1[H:2 * H] - w1[2 * H:3 * H]
    w1c = w1[3 * H:4 * H]
    w1cat = jnp.concatenate([w1a, w1b, w1c], axis=0).astype(jnp.bfloat16)
    c_pad = max(_LANE, ((C + _LANE - 1) // _LANE) * _LANE)
    w2p = jnp.zeros((M2, c_pad), jnp.bfloat16).at[:, :C].set(
        w2.astype(jnp.bfloat16))
    b2p = jnp.zeros((1, c_pad), jnp.float32).at[:, :C].set(
        b2.astype(jnp.float32))
    return {"w1cat": w1cat, "b1": b1.astype(jnp.float32),
            "w2p": w2p, "b2p": b2p}


@functools.partial(jax.jit, static_argnames=("num_classes",))
def roberta_mlp_forward(prepared, output_x, output_y, output_z,
                        x_position, y_position, z_position, *, num_classes):
    """Forward pass (Sub and Mul both enabled, loss_out=None)."""
    B, S, H = output_x.shape
    w1cat, b1 = prepared["w1cat"], prepared["b1"]
    w2p, b2p = prepared["w2p"], prepared["b2p"]
    M2 = w1cat.shape[1]
    c_pad = w2p.shape[1]

    rows = 3 * B
    rows_pad = ((rows + _SUBLANE - 1) // _SUBLANE) * _SUBLANE

    out = pl.pallas_call(
        _fused_kernel,
        out_shape=jax.ShapeDtypeStruct((rows_pad, c_pad), jnp.float32),
        grid_spec=pltpu.PrefetchScalarGridSpec(
            num_scalar_prefetch=3,
            grid=(1,),
            in_specs=[
                pl.BlockSpec((B, S, H), lambda i, xp, yp, zp: (0, 0, 0)),   # output_x
                pl.BlockSpec((B, S, H), lambda i, xp, yp, zp: (0, 0, 0)),   # output_y
                pl.BlockSpec((B, S, H), lambda i, xp, yp, zp: (0, 0, 0)),   # output_z
                pl.BlockSpec((3 * H, M2), lambda i, xp, yp, zp: (0, 0)),    # W1 folded
                pl.BlockSpec((1, M2), lambda i, xp, yp, zp: (0, 0)),        # b1
                pl.BlockSpec((M2, c_pad), lambda i, xp, yp, zp: (0, 0)),    # W2 padded
                pl.BlockSpec((1, c_pad), lambda i, xp, yp, zp: (0, 0)),     # b2 padded
            ],
            out_specs=pl.BlockSpec((rows_pad, c_pad),
                                   lambda i, xp, yp, zp: (0, 0)),
        ),
        compiler_params=pltpu.CompilerParams(
            dimension_semantics=("arbitrary",),
            vmem_limit_bytes=32 * 1024 * 1024),
    )(x_position.astype(jnp.int32), y_position.astype(jnp.int32),
      z_position.astype(jnp.int32),
      output_x, output_y, output_z, w1cat, b1, w2p, b2p)

    alpha_logits = out[0:B, :num_classes]
    beta_logits = out[B:2 * B, :num_classes]
    gamma_logits = out[2 * B:3 * B, :num_classes]
    return alpha_logits, beta_logits, gamma_logits


def init_params(key, hidden_size, mlp_size, num_classes):
    # Matches nn.Linear init (uniform +-1/sqrt(fan_in)); weights stored as
    # [in_features, out_features] so x @ W + b matches PyTorch's x @ W.T + b.
    f1_in, f1_out = 4 * hidden_size, 2 * mlp_size
    f2_in, f2_out = 2 * mlp_size, num_classes
    k1, k2, k3, k4 = jax.random.split(key, 4)
    lim1 = 1.0 / (f1_in ** 0.5)
    lim2 = 1.0 / (f2_in ** 0.5)
    return {
        "w1": jax.random.uniform(k1, (f1_in, f1_out), jnp.float32, -lim1, lim1),
        "b1": jax.random.uniform(k2, (1, f1_out), jnp.float32, -lim1, lim1),
        "w2": jax.random.uniform(k3, (f2_in, f2_out), jnp.float32, -lim2, lim2),
        "b2": jax.random.uniform(k4, (1, f2_out), jnp.float32, -lim2, lim2),
    }


def _gather_event(hidden, pos):
    # reference: output_x[i, x_position[i], :]
    return jnp.take_along_axis(hidden, pos[:, None, None], axis=1).squeeze(1)


def _reference_forward(params, A, B2, C2):
    # Pure-f32 reference on the original (unfolded) weights / concat path.
    def one(e1, e2):
        rep = jnp.concatenate([e1, e2, e1 - e2, e1 * e2], axis=1)
        h = rep @ params["w1"] + params["b1"]
        h = jnp.where(h > 0, h, 0.2 * h)
        return h @ params["w2"] + params["b2"]
    return one(A, B2), one(B2, C2), one(A, C2)


if __name__ == "__main__":
    batch = 2
    seq = 8
    hidden_size = 32     # lambdas['roberta_hidden_size']
    mlp_size = 32        # lambdas['MLP_size']
    num_classes = 8      # e.g. Joint setting (4 HiEve + 4 MATRES classes)

    key = jax.random.PRNGKey(0)
    kp, kx, ky, kz, kpx, kpy, kpz = jax.random.split(key, 7)

    params = init_params(kp, hidden_size, mlp_size, num_classes)
    prepared = prepare_params(params, hidden_size)   # one-time, at model load
    jax.block_until_ready(prepared)

    # Stand-ins for RoBERTa encoder outputs: self.model(sent)[0] -> [B, L, H]
    output_x = jax.random.normal(kx, (batch, seq, hidden_size), jnp.float32)
    output_y = jax.random.normal(ky, (batch, seq, hidden_size), jnp.float32)
    output_z = jax.random.normal(kz, (batch, seq, hidden_size), jnp.float32)
    x_position = jax.random.randint(kpx, (batch,), 0, seq)
    y_position = jax.random.randint(kpy, (batch,), 0, seq)
    z_position = jax.random.randint(kpz, (batch,), 0, seq)

    alpha, beta, gamma = roberta_mlp_forward(
        prepared, output_x, output_y, output_z,
        x_position, y_position, z_position, num_classes=num_classes)
    jax.block_until_ready((alpha, beta, gamma))

    # Correctness check vs. the pure-f32 reference (bf16 matmul operands =>
    # slightly looser tolerance; expected quantization, not a bug).
    A = _gather_event(output_x, x_position)
    B = _gather_event(output_y, y_position)
    C = _gather_event(output_z, z_position)
    ra, rb, rg = _reference_forward(params, A, B, C)
    assert jnp.allclose(alpha, ra, atol=5e-2, rtol=5e-2), (alpha, ra)
    assert jnp.allclose(beta, rb, atol=5e-2, rtol=5e-2), (beta, rb)
    assert jnp.allclose(gamma, rg, atol=5e-2, rtol=5e-2), (gamma, rg)

    print("KERNEL_OK")
</pallas_src>

<mosaic_0001>
module attributes {stable_mosaic.version = 11 : i64} {
  func.func @_fused_kernel(%arg0: i32, %arg1: memref<2xi32, #tpu.memory_space<smem>>, %arg2: memref<2xi32, #tpu.memory_space<smem>>, %arg3: memref<2xi32, #tpu.memory_space<smem>>, %arg4: memref<2x8x32xf32, #tpu.memory_space<vmem>>, %arg5: memref<2x8x32xf32, #tpu.memory_space<vmem>>, %arg6: memref<2x8x32xf32, #tpu.memory_space<vmem>>, %arg7: memref<96x64xbf16, #tpu.memory_space<vmem>>, %arg8: memref<1x64xf32, #tpu.memory_space<vmem>>, %arg9: memref<64x128xbf16, #tpu.memory_space<vmem>>, %arg10: memref<1x128xf32, #tpu.memory_space<vmem>>, %arg11: memref<8x128xf32, #tpu.memory_space<vmem>>) attributes {dimension_semantics = [#tpu.dimension_semantics<arbitrary>], iteration_bounds = array<i64: 1>, scalar_prefetch = 3 : i64, scratch_operands = 0 : i64, tpu.core_type = #tpu.core_type<tc>, window_params = [{pipeline_mode = #tpu.pipeline_mode<synchronous>, transform_indices = @transform_0, window_bounds = array<i64: 2, 8, 32>}, {pipeline_mode = #tpu.pipeline_mode<synchronous>, transform_indices = @transform_1, window_bounds = array<i64: 2, 8, 32>}, {pipeline_mode = #tpu.pipeline_mode<synchronous>, transform_indices = @transform_2, window_bounds = array<i64: 2, 8, 32>}, {pipeline_mode = #tpu.pipeline_mode<synchronous>, transform_indices = @transform_3, window_bounds = array<i64: 96, 64>}, {pipeline_mode = #tpu.pipeline_mode<synchronous>, transform_indices = @transform_4, window_bounds = array<i64: 1, 64>}, {pipeline_mode = #tpu.pipeline_mode<synchronous>, transform_indices = @transform_5, window_bounds = array<i64: 64, 128>}, {pipeline_mode = #tpu.pipeline_mode<synchronous>, transform_indices = @transform_6, window_bounds = array<i64: 1, 128>}, {pipeline_mode = #tpu.pipeline_mode<synchronous>, transform_indices = @transform_7, window_bounds = array<i64: 8, 128>}]} {
    %c0 = arith.constant 0 : index
    %c0_0 = arith.constant 0 : index
    %c0_1 = arith.constant 0 : index
    %0 = vector.load %arg4[%c0, %c0_0, %c0_1] : memref<2x8x32xf32, #tpu.memory_space<vmem>>, vector<1x8x32xf32>
    %1 = vector.shape_cast %0 : vector<1x8x32xf32> to vector<8x32xf32>
    %2 = tpu.iota {dimensions = array<i32: 0>} : vector<8x32xi32>
    %c0_2 = arith.constant 0 : index
    %3 = memref.load %arg1[%c0_2] : memref<2xi32, #tpu.memory_space<smem>>
    %4 = vector.broadcast %3 : i32 to vector<8x32xi32>
    %5 = arith.cmpi eq, %2, %4 : vector<8x32xi32>
    %cst = arith.constant 0.000000e+00 : f32
    %6 = vector.broadcast %cst : f32 to vector<8x32xf32>
    %7 = arith.select %5, %1, %6 : vector<8x32xi1>, vector<8x32xf32>
    %cst_3 = arith.constant dense<0.000000e+00> : vector<32xf32>
    %8 = vector.multi_reduction <add>, %7, %cst_3 [0] : vector<8x32xf32> to vector<32xf32>
    %9 = vector.shape_cast %8 : vector<32xf32> to vector<1x32xf32>
    %c1 = arith.constant 1 : index
    %c0_4 = arith.constant 0 : index
    %c0_5 = arith.constant 0 : index
    %10 = vector.load %arg4[%c1, %c0_4, %c0_5] : memref<2x8x32xf32, #tpu.memory_space<vmem>>, vector<1x8x32xf32>
    %11 = vector.shape_cast %10 : vector<1x8x32xf32> to vector<8x32xf32>
    %12 = tpu.iota {dimensions = array<i32: 0>} : vector<8x32xi32>
    %c1_6 = arith.constant 1 : index
    %13 = memref.load %arg1[%c1_6] : memref<2xi32, #tpu.memory_space<smem>>
    %14 = vector.broadcast %13 : i32 to vector<8x32xi32>
    %15 = arith.cmpi eq, %12, %14 : vector<8x32xi32>
    %cst_7 = arith.constant 0.000000e+00 : f32
    %16 = vector.broadcast %cst_7 : f32 to vector<8x32xf32>
    %17 = arith.select %15, %11, %16 : vector<8x32xi1>, vector<8x32xf32>
    %cst_8 = arith.constant dense<0.000000e+00> : vector<32xf32>
    %18 = vector.multi_reduction <add>, %17, %cst_8 [0] : vector<8x32xf32> to vector<32xf32>
    %19 = vector.shape_cast %18 : vector<32xf32> to vector<1x32xf32>
    %20 = tpu.concatenate %9, %19 in 0 : vector<1x32xf32>, vector<1x32xf32> -> vector<2x32xf32>
    %c0_9 = arith.constant 0 : index
    %c0_10 = arith.constant 0 : index
    %c0_11 = arith.constant 0 : index
    %21 = vector.load %arg5[%c0_9, %c0_10, %c0_11] : memref<2x8x32xf32, #tpu.memory_space<vmem>>, vector<1x8x32xf32>
    %22 = vector.shape_cast %21 : vector<1x8x32xf32> to vector<8x32xf32>
    %23 = tpu.iota {dimensions = array<i32: 0>} : vector<8x32xi32>
    %c0_12 = arith.constant 0 : index
    %24 = memref.load %arg2[%c0_12] : memref<2xi32, #tpu.memory_space<smem>>
    %25 = vector.broadcast %24 : i32 to vector<8x32xi32>
    %26 = arith.cmpi eq, %23, %25 : vector<8x32xi32>
    %cst_13 = arith.constant 0.000000e+00 : f32
    %27 = vector.broadcast %cst_13 : f32 to vector<8x32xf32>
    %28 = arith.select %26, %22, %27 : vector<8x32xi1>, vector<8x32xf32>
    %cst_14 = arith.constant dense<0.000000e+00> : vector<32xf32>
    %29 = vector.multi_reduction <add>, %28, %cst_14 [0] : vector<8x32xf32> to vector<32xf32>
    %30 = vector.shape_cast %29 : vector<32xf32> to vector<1x32xf32>
    %c1_15 = arith.constant 1 : index
    %c0_16 = arith.constant 0 : index
    %c0_17 = arith.constant 0 : index
    %31 = vector.load %arg5[%c1_15, %c0_16, %c0_17] : memref<2x8x32xf32, #tpu.memory_space<vmem>>, vector<1x8x32xf32>
    %32 = vector.shape_cast %31 : vector<1x8x32xf32> to vector<8x32xf32>
    %33 = tpu.iota {dimensions = array<i32: 0>} : vector<8x32xi32>
    %c1_18 = arith.constant 1 : index
    %34 = memref.load %arg2[%c1_18] : memref<2xi32, #tpu.memory_space<smem>>
    %35 = vector.broadcast %34 : i32 to vector<8x32xi32>
    %36 = arith.cmpi eq, %33, %35 : vector<8x32xi32>
    %cst_19 = arith.constant 0.000000e+00 : f32
    %37 = vector.broadcast %cst_19 : f32 to vector<8x32xf32>
    %38 = arith.select %36, %32, %37 : vector<8x32xi1>, vector<8x32xf32>
    %cst_20 = arith.constant dense<0.000000e+00> : vector<32xf32>
    %39 = vector.multi_reduction <add>, %38, %cst_20 [0] : vector<8x32xf32> to vector<32xf32>
    %40 = vector.shape_cast %39 : vector<32xf32> to vector<1x32xf32>
    %41 = tpu.concatenate %30, %40 in 0 : vector<1x32xf32>, vector<1x32xf32> -> vector<2x32xf32>
    %c0_21 = arith.constant 0 : index
    %c0_22 = arith.constant 0 : index
    %c0_23 = arith.constant 0 : index
    %42 = vector.load %arg6[%c0_21, %c0_22, %c0_23] : memref<2x8x32xf32, #tpu.memory_space<vmem>>, vector<1x8x32xf32>
    %43 = vector.shape_cast %42 : vector<1x8x32xf32> to vector<8x32xf32>
    %44 = tpu.iota {dimensions = array<i32: 0>} : vector<8x32xi32>
    %c0_24 = arith.constant 0 : index
    %45 = memref.load %arg3[%c0_24] : memref<2xi32, #tpu.memory_space<smem>>
    %46 = vector.broadcast %45 : i32 to vector<8x32xi32>
    %47 = arith.cmpi eq, %44, %46 : vector<8x32xi32>
    %cst_25 = arith.constant 0.000000e+00 : f32
    %48 = vector.broadcast %cst_25 : f32 to vector<8x32xf32>
    %49 = arith.select %47, %43, %48 : vector<8x32xi1>, vector<8x32xf32>
    %cst_26 = arith.constant dense<0.000000e+00> : vector<32xf32>
    %50 = vector.multi_reduction <add>, %49, %cst_26 [0] : vector<8x32xf32> to vector<32xf32>
    %51 = vector.shape_cast %50 : vector<32xf32> to vector<1x32xf32>
    %c1_27 = arith.constant 1 : index
    %c0_28 = arith.constant 0 : index
    %c0_29 = arith.constant 0 : index
    %52 = vector.load %arg6[%c1_27, %c0_28, %c0_29] : memref<2x8x32xf32, #tpu.memory_space<vmem>>, vector<1x8x32xf32>
    %53 = vector.shape_cast %52 : vector<1x8x32xf32> to vector<8x32xf32>
    %54 = tpu.iota {dimensions = array<i32: 0>} : vector<8x32xi32>
    %c1_30 = arith.constant 1 : index
    %55 = memref.load %arg3[%c1_30] : memref<2xi32, #tpu.memory_space<smem>>
    %56 = vector.broadcast %55 : i32 to vector<8x32xi32>
    %57 = arith.cmpi eq, %54, %56 : vector<8x32xi32>
    %cst_31 = arith.constant 0.000000e+00 : f32
    %58 = vector.broadcast %cst_31 : f32 to vector<8x32xf32>
    %59 = arith.select %57, %53, %58 : vector<8x32xi1>, vector<8x32xf32>
    %cst_32 = arith.constant dense<0.000000e+00> : vector<32xf32>
    %60 = vector.multi_reduction <add>, %59, %cst_32 [0] : vector<8x32xf32> to vector<32xf32>
    %61 = vector.shape_cast %60 : vector<32xf32> to vector<1x32xf32>
    %62 = tpu.concatenate %51, %61 in 0 : vector<1x32xf32>, vector<1x32xf32> -> vector<2x32xf32>
    %63 = tpu.concatenate %20, %41, %20 in 0 : vector<2x32xf32>, vector<2x32xf32>, vector<2x32xf32> -> vector<6x32xf32>
    %64 = tpu.concatenate %41, %62, %62 in 0 : vector<2x32xf32>, vector<2x32xf32>, vector<2x32xf32> -> vector<6x32xf32>
    %65 = arith.mulf %63, %64 : vector<6x32xf32>
    %66 = tpu.concatenate %63, %64, %65 in 1 : vector<6x32xf32>, vector<6x32xf32>, vector<6x32xf32> -> vector<6x96xf32>
    %cst_33 = arith.constant 0.000000e+00 : f32
    %67 = vector.broadcast %cst_33 : f32 to vector<2x96xf32>
    %68 = tpu.concatenate %66, %67 in 0 : vector<6x96xf32>, vector<2x96xf32> -> vector<8x96xf32>
    %69 = arith.truncf %68 : vector<8x96xf32> to vector<8x96xbf16>
    %c0_34 = arith.constant 0 : index
    %c0_35 = arith.constant 0 : index
    %70 = vector.load %arg7[%c0_34, %c0_35] : memref<96x64xbf16, #tpu.memory_space<vmem>>, vector<96x64xbf16>
    %cst_36 = arith.constant dense<0.000000e+00> : vector<8x64xf32>
    %71 = tpu.matmul %69, %70, %cst_36 {dimension_numbers = #tpu.dot_dimension_numbers<[1], [0], [0], [1], [0, 0, 1, 1], [], []>} : vector<8x96xbf16>, vector<96x64xbf16>, vector<8x64xf32> -> vector<8x64xf32>
    %c0_37 = arith.constant 0 : index
    %c0_38 = arith.constant 0 : index
    %72 = vector.load %arg8[%c0_37, %c0_38] : memref<1x64xf32, #tpu.memory_space<vmem>>, vector<1x64xf32>
    %73 = vector.broadcast %72 : vector<1x64xf32> to vector<8x64xf32>
    %74 = arith.addf %71, %73 : vector<8x64xf32>
    %cst_39 = arith.constant 0.000000e+00 : f32
    %75 = vector.broadcast %cst_39 : f32 to vector<8x64xf32>
    %76 = arith.cmpf ogt, %74, %75 : vector<8x64xf32>
    %cst_40 = arith.constant 2.000000e-01 : f32
    %77 = vector.broadcast %cst_40 : f32 to vector<8x64xf32>
    %78 = arith.mulf %77, %74 : vector<8x64xf32>
    %79 = arith.select %76, %74, %78 : vector<8x64xi1>, vector<8x64xf32>
    %80 = arith.truncf %79 : vector<8x64xf32> to vector<8x64xbf16>
    %c0_41 = arith.constant 0 : index
    %c0_42 = arith.constant 0 : index
    %81 = vector.load %arg9[%c0_41, %c0_42] : memref<64x128xbf16, #tpu.memory_space<vmem>>, vector<64x128xbf16>
    %cst_43 = arith.constant dense<0.000000e+00> : vector<8x128xf32>
    %82 = tpu.matmul %80, %81, %cst_43 {dimension_numbers = #tpu.dot_dimension_numbers<[1], [0], [0], [1], [0, 0, 1, 1], [], []>} : vector<8x64xbf16>, vector<64x128xbf16>, vector<8x128xf32> -> vector<8x128xf32>
    %c0_44 = arith.constant 0 : index
    %c0_45 = arith.constant 0 : index
    %83 = vector.load %arg10[%c0_44, %c0_45] : memref<1x128xf32, #tpu.memory_space<vmem>>, vector<1x128xf32>
    %84 = vector.broadcast %83 : vector<1x128xf32> to vector<8x128xf32>
    %85 = arith.addf %82, %84 : vector<8x128xf32>
    %c0_46 = arith.constant 0 : index
    %c0_47 = arith.constant 0 : index
    %86 = vector.load %arg11[%c0_46, %c0_47] : memref<8x128xf32, #tpu.memory_space<vmem>>, vector<8x128xf32>
    tpu.vector_store %arg11[%c0_46, %c0_47], %85 {strides = array<i32>} : memref<8x128xf32, #tpu.memory_space<vmem>>, vector<8x128xf32>,
    return
  }
  func.func @transform_0(%arg0: i32, %arg1: memref<2xi32, #tpu.memory_space<smem>>, %arg2: memref<2xi32, #tpu.memory_space<smem>>, %arg3: memref<2xi32, #tpu.memory_space<smem>>) -> (i32, i32, i32) {
    %c0_i32 = arith.constant 0 : i32
    %c0_i32_0 = arith.constant 0 : i32
    %c0_i32_1 = arith.constant 0 : i32
    %c0_i32_2 = arith.constant 0 : i32
    return %c0_i32, %c0_i32_0, %c0_i32_1 : i32, i32, i32
  }
  func.func @transform_1(%arg0: i32, %arg1: memref<2xi32, #tpu.memory_space<smem>>, %arg2: memref<2xi32, #tpu.memory_space<smem>>, %arg3: memref<2xi32, #tpu.memory_space<smem>>) -> (i32, i32, i32) {
    %c0_i32 = arith.constant 0 : i32
    %c0_i32_0 = arith.constant 0 : i32
    %c0_i32_1 = arith.constant 0 : i32
    %c0_i32_2 = arith.constant 0 : i32
    return %c0_i32, %c0_i32_0, %c0_i32_1 : i32, i32, i32
  }
  func.func @transform_2(%arg0: i32, %arg1: memref<2xi32, #tpu.memory_space<smem>>, %arg2: memref<2xi32, #tpu.memory_space<smem>>, %arg3: memref<2xi32, #tpu.memory_space<smem>>) -> (i32, i32, i32) {
    %c0_i32 = arith.constant 0 : i32
    %c0_i32_0 = arith.constant 0 : i32
    %c0_i32_1 = arith.constant 0 : i32
    %c0_i32_2 = arith.constant 0 : i32
    return %c0_i32, %c0_i32_0, %c0_i32_1 : i32, i32, i32
  }
  func.func @transform_3(%arg0: i32, %arg1: memref<2xi32, #tpu.memory_space<smem>>, %arg2: memref<2xi32, #tpu.memory_space<smem>>, %arg3: memref<2xi32, #tpu.memory_space<smem>>) -> (i32, i32) {
    %c0_i32 = arith.constant 0 : i32
    %c0_i32_0 = arith.constant 0 : i32
    %c0_i32_1 = arith.constant 0 : i32
    return %c0_i32, %c0_i32_0 : i32, i32
  }
  func.func @transform_4(%arg0: i32, %arg1: memref<2xi32, #tpu.memory_space<smem>>, %arg2: memref<2xi32, #tpu.memory_space<smem>>, %arg3: memref<2xi32, #tpu.memory_space<smem>>) -> (i32, i32) {
    %c0_i32 = arith.constant 0 : i32
    %c0_i32_0 = arith.constant 0 : i32
    %c0_i32_1 = arith.constant 0 : i32
    return %c0_i32, %c0_i32_0 : i32, i32
  }
  func.func @transform_5(%arg0: i32, %arg1: memref<2xi32, #tpu.memory_space<smem>>, %arg2: memref<2xi32, #tpu.memory_space<smem>>, %arg3: memref<2xi32, #tpu.memory_space<smem>>) -> (i32, i32) {
    %c0_i32 = arith.constant 0 : i32
    %c0_i32_0 = arith.constant 0 : i32
    %c0_i32_1 = arith.constant 0 : i32
    return %c0_i32, %c0_i32_0 : i32, i32
  }
  func.func @transform_6(%arg0: i32, %arg1: memref<2xi32, #tpu.memory_space<smem>>, %arg2: memref<2xi32, #tpu.memory_space<smem>>, %arg3: memref<2xi32, #tpu.memory_space<smem>>) -> (i32, i32) {
    %c0_i32 = arith.constant 0 : i32
    %c0_i32_0 = arith.constant 0 : i32
    %c0_i32_1 = arith.constant 0 : i32
    return %c0_i32, %c0_i32_0 : i32, i32
  }
  func.func @transform_7(%arg0: i32, %arg1: memref<2xi32, #tpu.memory_space<smem>>, %arg2: memref<2xi32, #tpu.memory_space<smem>>, %arg3: memref<2xi32, #tpu.memory_space<smem>>) -> (i32, i32) {
    %c0_i32 = arith.constant 0 : i32
    %c0_i32_0 = arith.constant 0 : i32
    %c0_i32_1 = arith.constant 0 : i32
    return %c0_i32, %c0_i32_0 : i32, i32
  }
}

</mosaic_0001>

<bundles_post_ra>
// kernel: roberta_mlp_forward.1
= control target key start
LH: loop header
LB: loop body
LE: loop exit
PB: predicated region body
PF: predicated region fallthrough
CT: control target
= control target key end

     0   :  { %s721_s0 = inlined_call_operand.vmem [shape: s32[2], index: 0, kind: input, shape index: {}]   ;;  %s722_s3 = inlined_call_operand.vmem [shape: f32[2,8,32], index: 3, kind: input, shape index: {}]   ;;  %s723_s4 = inlined_call_operand.vmem [shape: f32[2,8,32], index: 4, kind: input, shape index: {}]   ;;  %s724_s5 = inlined_call_operand.vmem [shape: f32[2,8,32], index: 5, kind: input, shape index: {}]   ;;  %s725_s6 = inlined_call_operand.vmem [shape: bf16[96,64], index: 6, kind: input, shape index: {}]   ;;  %s726_s7 = inlined_call_operand.hbm [shape: f32[1,64], index: 7, kind: input, shape index: {}]   ;;  %s727_s8 = inlined_call_operand.vmem [shape: bf16[64,128], index: 8, kind: input, shape index: {}]   ;;  %s728_s9 = inlined_call_operand.hbm [shape: f32[1,128], index: 9, kind: input, shape index: {}]   ;;  %s729_s10 = inlined_call_operand.vmem [shape: f32[8,128], index: 10, kind: output, shape index: {}]   ;;  %s730_s1 = inlined_call_operand.vmem [shape: s32[2], index: 1, kind: input, shape index: {}]   ;;  %s731_s2 = inlined_call_operand.vmem [shape: s32[2], index: 2, kind: input, shape index: {}]  }
   0x1   :  { %s15_s15 = sshll.u32 %s721_s0, 4  ;;  %s19_s18 = sshll.u32 %s730_s1, 4  ;;  %s16_s15 = int_to_ptr.vmem [resolvable:$true] %s15_s15  ;;  %s20_s18 = int_to_ptr.vmem [resolvable:$true] %s19_s18 }
   0x2   :  { %s453_s19 = scalar_lea.vmem %s16_s15, 16  ;;  %p458_p1 = scmp.lt.s32.totalorder %s16_s15, %s16_s15 }
   0x3   :  { %p454_p0 = scmp.ne.s32.totalorder %s16_s15, %s453_s19  ;;  %p459_p2 = scmp.lt.s32.totalorder %s453_s19, %s453_s19 }
   0x5   :  { %p460_p3 = por %p459_p2, %p458_p1 }
   0x7   :  { %p461_p4 = pnand %p460_p3, %p454_p0 }
   0x9   :  { %464 = shalt.err (!%p461_p4)  }
   0xa   :  { %s539_s20 = smov [#allocation3]   ;;  %s465_s21 = scalar_lea.vmem %s20_s18, 16 }
   0xb   :  { %18 = dma.vmem_to_smem %s16_s15, 16, %s539_s20, [#allocation2] }
   0xc   :  { %p466_p5 = scmp.ne.s32.totalorder %s20_s18, %s465_s21  ;;  %p470_p6 = scmp.lt.s32.totalorder %s20_s18, %s20_s18 }
   0xd   :  { %p471_p7 = scmp.lt.s32.totalorder %s465_s21, %s465_s21 }
   0xf   :  { %p472_p8 = por %p471_p7, %p470_p6 }
  0x11   :  { %p473_p9 = pnand %p472_p8, %p466_p5 }
  0x13   :  { %476 = shalt.err (!%p473_p9)  }
  0x14   :  { %s540_s0 = smov [#allocation4]   ;;  %s23_s23 = sshll.u32 %s731_s2, 4  ;;  %s24_s23 = int_to_ptr.vmem [resolvable:$true] %s23_s23 }
  0x15   :  { %22 = dma.vmem_to_smem %s20_s18, 16, %s540_s0, [#allocation2] }
  0x16   :  { %s477_s24 = scalar_lea.vmem %s24_s23, 16  ;;  %p482_p11 = scmp.lt.s32.totalorder %s24_s23, %s24_s23 }
  0x17   :  { %p478_p10 = scmp.ne.s32.totalorder %s24_s23, %s477_s24  ;;  %p483_p12 = scmp.lt.s32.totalorder %s477_s24, %s477_s24 }
  0x19   :  { %p484_p13 = por %p483_p12, %p482_p11 }
  0x1b   :  { %p485_p0 = pnand %p484_p13, %p478_p10 }
  0x1d   :  { %488 = shalt.err (!%p485_p0)  }
  0x1e   :  { %s541_s25 = smov [#allocation5]  }
  0x1f   :  { %26 = dma.vmem_to_smem %s24_s23, 16, %s541_s25, [#allocation2] }
  0x20   :  { %533 = dma.done.wait [#allocation2], 48 }
  0x21   :  { %534 = vsyncadd [#allocation2], 4294967248 }
  0x22   :  { %28 = sfence }
  0x23   :  { %29 = vsyncpa [#allocation7], 0 }
  0x24   :  { %30 = vsyncpa [#allocation9], 0  ;;  %s542_s26 = smov [#allocation6]   ;;  %s543_s28 = smov [#allocation8]  }
  0x25   :  { %s45_s27 = sshll.u32 %s542_s26, 4  ;;  %s57_s29 = sshll.u32 %s543_s28, 4  ;;  %s46_s27 = int_to_ptr.vmem [resolvable:$true] %s45_s27  ;;  %s58_s29 = int_to_ptr.vmem [resolvable:$true] %s57_s29 }
  0x26   :  { %s489_s11 = scalar_lea.hbm %s726_s7, 16 }
  0x27   :  { %p490_p1 = scmp.ne.s32.totalorder %s726_s7, %s489_s11  ;;  %p493_p2 = scmp.lt.u32.totalorder %s489_s11, %s726_s7 }
  0x29   :  { %p495_p3 = pnand %p493_p2, %p490_p1 }
  0x2b   :  { %498 = shalt.err (!%p495_p3)
}
  0x2c   :  { %s499_s16 = scalar_lea.vmem %s46_s27, 16  ;;  %s503_s17 = scalar_lea.vmem %s46_s27, 32 }
  0x2d   :  { %p500_p4 = scmp.ne.s32.totalorder %s46_s27, %s499_s16  ;;  %p504_p5 = scmp.lt.s32.totalorder %s46_s27, %s46_s27 }
  0x2e   :  { %p505_p6 = scmp.lt.s32.totalorder %s503_s17, %s499_s16 }
  0x30   :  { %p506_p7 = por %p505_p6, %p504_p5 }
  0x32   :  { %p507_p8 = pnand %p506_p7, %p500_p4 }
  0x34   :  { %510 = shalt.err (!%p507_p8)
}
  0x35   :  { %48 = dma.hbm_to_vmem [thread:$0]  %s726_s7, 16, %s46_s27, [#allocation7]  }
  0x36   :  { %s511_s0 = scalar_lea.hbm %s728_s9, 16 }
  0x37   :  { %p512_p9 = scmp.ne.s32.totalorder %s728_s9, %s511_s0  ;;  %p515_p10 = scmp.lt.u32.totalorder %s511_s0, %s728_s9 }
  0x39   :  { %p517_p11 = pnand %p515_p10, %p512_p9 }
  0x3b   :  { %520 = shalt.err (!%p517_p11)
}
  0x3c   :  { %s521_s25 = scalar_lea.vmem %s58_s29, 16  ;;  %s525_s26 = scalar_lea.vmem %s58_s29, 32 }
  0x3d   :  { %p522_p12 = scmp.ne.s32.totalorder %s58_s29, %s521_s25  ;;  %p526_p13 = scmp.lt.s32.totalorder %s58_s29, %s58_s29 }
  0x3e   :  { %p527_p0 = scmp.lt.s32.totalorder %s525_s26, %s521_s25 }
  0x40   :  { %p528_p1 = por %p527_p0, %p526_p13 }
  0x42   :  { %p529_p2 = pnand %p528_p1, %p522_p12 }
  0x44   :  { %532 = shalt.err (!%p529_p2)
}
  0x45   :  { %60 = dma.hbm_to_vmem [thread:$0]  %s728_s9, 16, %s58_s29, [#allocation9]  }
  0x46   :  { %535 = dma.done.wait [#allocation7], 16  }
  0x47   :  { %536 = vsyncadd [#allocation7], 4294967280 }
  0x48   :  { %537 = dma.done.wait [#allocation9], 16  }
  0x49   :  { %538 = vsyncadd [#allocation9], 4294967280  ;;  %v69_v0 = vlaneseq  ;;  %s99_s28 = sld [smem:[#allocation4]]  ;;  %s377_s2 = sld [smem:[#allocation4 + $0x1]]  ;;  %v544_v1 = vmov 0.0   ;;  %vm75_vm0 = vcmask 261120  }
  0x4a   :  { %s125_s30 = sld [smem:[#allocation5]]  ;;  %s379_s11 = sld [smem:[#allocation5 + $0x1]]  ;;  %406 = vmatprep.subr.bf16.mxu0 %v544_v1  ;;  %422 = vmatprep.subr.bf16.mxu1 %v544_v1  ;;  %v98_v3 = vld [vmem:[%s723_s4] sm:$0xff]  ;;  %v376_v5 = vld [vmem:[%s723_s4 + $0x8] sm:$0xff]  ;;  %vm96_vm7 = vcmask 1040384   ;;  %v445_v45 = vld [vmem:[%s725_s6 + $0x10] sm:$0xff]  }
  0x4b   :  { %s638_s12 = sld [smem:[#allocation3]]  ;;  %s640_s13 = sld [smem:[#allocation3 + $0x1]]  ;;  %v70_v2 = vshrl.u32 %v69_v0, 7  ;;  %v124_v7 = vld [vmem:[%s724_s5] sm:$0xff]  ;;  %v378_v9 = vld [vmem:[%s724_s5 + $0x8] sm:$0xff]  ;;  %v446_v56 = vld [vmem:[%s725_s6 + $0x18] sm:$0xff]  }
  0x4c   :  { %v68_v13 = vld [vmem:[%s722_s3] sm:$0xff]  ;;  %v374_v22 = vld [vmem:[%s722_s3 + $0x8] sm:$0xff]  ;;  %vm156_vm8 = vcmask 1041408   ;;  %vm545_vm9 = vmmov 0   ;;  %vm158_vm10 = vcmask 1043456   ;;  %s547_s29 = smov 64  }
  0x4d   :  { %v443_v23 = vld [vmem:[%s725_s6] sm:$0xff]   ;;  %v444_v30 = vld [vmem:[%s725_s6 + $0x8] sm:$0xff]   ;;  %418 = vmatprep.mubr.msk.bf16.mxu0 %vm545_vm9, %v544_v1  ;;  %430 = vmatprep.mubr.msk.bf16.mxu1 %vm545_vm9, %v544_v1  ;;  %vm177_vm11 = vcmask 523264   ;;  %vm179_vm12 = vcmask 1045504   ;;  %vm237_vm13 = vcmask 785408  }
  0x4e   :  { %407 = vmatpush3.bf16.msra.mxu0 %v443_v23 }
  0x4f   :  { %v100_v4 = vstv %s99_s28  ;;  %v113_v6 = vstv %s377_s2  ;;  %408 = vmatprep.subr.bf16.mxu0 %v544_v1 }
  0x50   :  { %vm101_vm1 = vcmp.eq.s32.totalorder %v70_v2, %v100_v4  ;;  %vm114_vm2 = vcmp.eq.s32.totalorder %v70_v2, %v113_v6  ;;  %v126_v8 = vstv %s125_s30  ;;  %v139_v10 = vstv %s379_s11 }
  0x51   :  { %v102_v11 = vsel %vm101_vm1, %v98_v3, 0.0  ;;  %v115_v12 = vsel %vm114_vm2, %v376_v5, 0.0  ;;  %vm127_vm3 = vcmp.eq.s32.totalorder %v70_v2, %v126_v8  ;;  %vm140_vm4 = vcmp.eq.s32.totalorder %v70_v2, %v139_v10  ;;  %v449_v8 = vld [vmem:[%s727_s8] sm:$0xff]  }
  0x52   :  { %v103_v14 = vsel %vm75_vm0, %v102_v11, 0.0  ;;  %v116_v15 = vsel %vm75_vm0, %v115_v12, 0.0  ;;  %v128_v16 = vsel %vm127_vm3, %v124_v7, 0.0  ;;  %v141_v17 = vsel %vm140_vm4, %v378_v9, 0.0  ;;  %409 = vmatpush3.bf16.msra.mxu0 %v444_v30  ;;  %v447_v7 = vld [vmem:[%s725_s6 + $0x20] sm:$0xff]   ;;  %423 = vmatpush3.bf16.msra.mxu1 %v449_v8  ;;  %v450_v12 = vld [vmem:[%s727_s8 + $0x8] sm:$0xff]  }
  0x53   :  { %v104_v18 = vrot.slane %v103_v14, 4  ;;  %v117_v19 = vrot.slane %v116_v15, 4  ;;  %v129_v20 = vsel %vm75_vm0, %v128_v16, 0.0  ;;  %v142_v21 = vsel %vm75_vm0, %v141_v17, 0.0  ;;  %410 = vmatprep.subr.bf16.mxu0 %v544_v1  ;;  %424 = vmatprep.subr.bf16.mxu1 %v544_v1  ;;  %v448_v17 = vld [vmem:[%s725_s6 + $0x28] sm:$0xff]  }
  0x54   :  { %v130_v24 = vrot.slane %v129_v20, 4  ;;  %v143_v25 = vrot.slane %v142_v21, 4  ;;  %v72_v26 = vstv %s638_s12  ;;  %v86_v27 = vstv %s640_s13  ;;  %s546_s12 = smov 32  }
  0x55   :  { %v105_v28 = vadd.f32 %v104_v18, %v103_v14  ;;  %v118_v29 = vadd.f32 %v117_v19, %v116_v15  ;;  %vm73_vm5 = vcmp.eq.s32.totalorder %v70_v2, %v72_v26  ;;  %vm87_vm6 = vcmp.eq.s32.totalorder %v70_v2, %v86_v27  ;;  %v451_v26 = vld [vmem:[%s727_s8 + $0x10] sm:$0xff]   ;;  %v452_v27 = vld [vmem:[%s727_s8 + $0x18] sm:$0xff]  }
  0x56   :  { %v131_v31 = vadd.f32 %v130_v24, %v129_v20  ;;  %v144_v32 = vadd.f32 %v143_v25, %v142_v21  ;;  %v74_v33 = vsel %vm73_vm5, %v68_v13, 0.0  ;;  %v88_v34 = vsel %vm87_vm6, %v374_v22, 0.0  ;;  %411 = vmatpush3.bf16.msra.mxu0 %v445_v45  ;;  %425 = vmatpush3.bf16.msra.mxu1 %v450_v12 }
  0x57   :  { %v106_v35 = vrot.slane %v105_v28, 2  ;;  %v119_v36 = vrot.slane %v118_v29, 2  ;;  %v76_v37 = vsel %vm75_vm0, %v74_v33, 0.0  ;;  %v89_v38 = vsel %vm75_vm0, %v88_v34, 0.0  ;;  %412 = vmatprep.subr.bf16.mxu0 %v544_v1  ;;  %426 = vmatprep.subr.bf16.mxu1 %v544_v1 }
  0x58   :  { %v132_v39 = vrot.slane %v131_v31, 2  ;;  %v145_v40 = vrot.slane %v144_v32, 2  ;;  %v77_v41 = vrot.slane %v76_v37, 4  ;;  %v90_v42 = vrot.slane %v89_v38, 4 }
  0x59   :  { %v107_v43 = vadd.f32 %v106_v35, %v105_v28  ;;  %v120_v44 = vadd.f32 %v119_v36, %v118_v29  ;;  %v380_v28 = vld [vmem:[#allocation6] ss:$0 sm:$0xff] }
  0x5a   :  { %v133_v46 = vadd.f32 %v132_v39, %v131_v31  ;;  %v146_v47 = vadd.f32 %v145_v40, %v144_v32  ;;  %v78_v48 = vadd.f32 %v77_v41, %v76_v37  ;;  %v91_v49 = vadd.f32 %v90_v42, %v89_v38  ;;  %413 = vmatpush3.bf16.msra.mxu0 %v446_v56  ;;  %v388_v37 = vld [vmem:[#allocation8] ss:$0 sm:$0xff] }
  0x5b   :  { %v108_v50 = vrot.slane %v107_v43, 1  ;;  %v121_v51 = vrot.slane %v120_v44, 1  ;;  %414 = vmatprep.subr.bf16.mxu0 %v544_v1  ;;  %427 = vmatpush3.bf16.msra.mxu1 %v451_v26 }
  0x5c   :  { %v134_v52 = vrot.slane %v133_v46, 1  ;;  %v147_v53 = vrot.slane %v146_v47, 1  ;;  %v79_v54 = vrot.slane %v78_v48, 2  ;;  %v92_v55 = vrot.slane %v91_v49, 2  ;;  %428 = vmatprep.subr.bf16.mxu1 %v544_v1 }
  0x5d   :  { %v109_v57 = vadd.f32 %v108_v50, %v107_v43  ;;  %v122_v58 = vadd.f32 %v121_v51, %v120_v44 }
  0x5e   :  { %v135_v59 = vadd.f32 %v134_v52, %v133_v46  ;;  %v148_v60 = vadd.f32 %v147_v53, %v146_v47  ;;  %v80_v61 = vadd.f32 %v79_v54, %v78_v48  ;;  %v93_v62 = vadd.f32 %v92_v55, %v91_v49  ;;  %415 = vmatpush3.bf16.msra.mxu0 %v447_v7 }
  0x5f   :  { %v123_v63 = vsel %vm96_vm7, %v109_v57, %v122_v58  ;;  %416 = vmatprep.subr.bf16.mxu0 %v544_v1  ;;  %429 = vmatpush3.bf16.msra.mxu1 %v452_v27 }
  0x60   :  { %v149_v0 = vsel %vm96_vm7, %v135_v59, %v148_v60  ;;  %v81_v2 = vrot.slane %v80_v61, 1  ;;  %v94_v3 = vrot.slane %v93_v62, 1  ;;  %v151_v6 = vrot.slane %v123_v63, 6 }
  0x61   :  { %v161_v4 = vrot.slane %v149_v0, 6  ;;  %v163_v5 = vrot.slane %v149_v0, 4 }
  0x62   :  { %v82_v9 = vadd.f32 %v81_v2, %v80_v61  ;;  %v95_v10 = vadd.f32 %v94_v3, %v93_v62  ;;  %417 = vmatpush3.bf16.msra.mxu0 %v448_v17 }
  0x63   :  { %v165_v11 = vsel %vm156_vm8, %v123_v63, %v161_v4 }
  0x64   :  { %v166_v13 = vsel %vm158_vm10, %v165_v11, %v163_v5  ;;  %v97_v14 = vsel %vm96_vm7, %v82_v9, %v95_v10 }
  0x65   :  { %169 = vrot.lane.b32.xlu0 %v166_v13, %s546_s12  ;;  %v154_v15 = vrot.slane %v97_v14, 4  ;;  %v157_v16 = vsel %vm156_vm8, %v97_v14, %v151_v6 }
  0x67   :  { %v159_v18 = vsel %vm158_vm10, %v157_v16, %v154_v15 }
  0x68   :  { %v167_v19 = vmul.f32 %v166_v13, %v159_v18 }
  0x6a   :  { %173 = vrot.lane.b32.xlu0 %v167_v19, %s547_s29 }
  0xd7   :  { %v170_v20 = vpop.permute.xlu0 %169 }
  0xd8   :  { %v176_v21 = vsel %vm75_vm0, %v159_v18, %v170_v20 }
  0xdc   :  { %v174_v22 = vpop.permute.xlu0 %173 }
  0xdd   :  { %v178_v23 = vsel %vm177_vm11, %v176_v21, %v174_v22 }
  0xde   :  { %v180_v24 = vsel %vm179_vm12, %v178_v23, 0.0 }
  0xdf   :  { %v181_v25 = vpack.c.bf16 %v180_v24, %v180_v24 }
  0xe1   :  { %419 = vmatmul.mubr.msk.bf16.vlgmr.msra.gmra.mrb[0].mxu0 %vm237_vm13, %v181_v25 }
 0x1b4   :  { %v275_v29 = vpop.f32.mrb[0].mxu0 }
 0x1b5   :  { %v276_v30 = vadd.f32 %v380_v28, %v275_v29  ;;  %v420_v31 = vpop.f32.mrb[1].mxu0 }
 0x1b6   :  { %v278_v32 = vpop.f32.mrb[2].mxu0 }
 0x1b7   :  { %vm281_vm14 = vcmp.gt.f32.partialorder %v276_v30, 0.0  ;;  %v282_v33 = vmul.f32 0.2, %v276_v30  ;;  %v421_v34 = vpop.f32.mrb[3].mxu0 }
 0x1b9   :  { %v283_v35 = vsel %vm281_vm14, %v276_v30, %v282_v33 }
 0x1ba   :  { %v284_v36 = vpack.c.bf16 %v283_v35, %v283_v35 }
 0x1bc   :  { %431 = vmatmul.mubr.msk.bf16.vlgmr.msra.gmra.mrb[0].mxu1 %vm177_vm11, %v284_v36 }
 0x28f   :  { %v361_v38 = vpop.f32.mrb[0].mxu1 }
 0x290   :  { %v362_v1 = vadd.f32 %v388_v37, %v361_v38  ;;  %v432_v39 = vpop.f32.mrb[1].mxu1 }
 0x291   :  { %v364_v40 = vpop.f32.mrb[2].mxu1 }
 0x292   :  { %367 = vst [vmem:[%s729_s10] sm:$0xff] %v362_v1  ;;  %v433_v41 = vpop.f32.mrb[3].mxu1 }
 0x293   :  { %372 = vsyncpa [#allocation7], 1 }
 0x294   :  { %373 = vsyncpa [#allocation9], 1 }

</bundles_post_ra>
